<compile_context>
chip_gen: v6e
topology: v6e:2x2x1
jax: 0.10.0
libtpu: 0.0.40
codegen_flags: <defaults>
</compile_context>

<pallas_src>
import functools

import jax
import jax.numpy as jnp
from jax import lax
from jax.experimental import pallas as pl
from jax.experimental.pallas import tpu as pltpu

_EPS = 1e-12            # F.normalize eps (clamp on the norm)
_EPS2 = _EPS * _EPS     # clamp on the squared norm
_LANES = 128


def _round_up(v, m):
    return (v + m - 1) // m * m


def _cdiv(a, b):
    return -(-a // b)


# ----------------------------------------------------------------------------
# Path 1: one-shot kernel for small problems (whole x fits comfortably in VMEM)
# ----------------------------------------------------------------------------
def _group_comp_small_kernel(x_ref, o_ref, *, half):
    S = x_ref.shape[0]
    x = x_ref[...].astype(jnp.float32)                       # (S, D)
    m1 = jnp.mean(x[:half], axis=0, keepdims=True)           # (1, D)
    m2 = jnp.mean(x[half:], axis=0, keepdims=True)           # (1, D)
    row = lax.broadcasted_iota(jnp.int32, (S, 1), 0)
    m = jnp.where(row < half, m1, m2)                        # (S, D) per-row group mean
    dots = jnp.sum(x * m, axis=1, keepdims=True)             # (S, 1)
    xsq = jnp.sum(x * x, axis=1, keepdims=True)              # (S, 1)
    msq = jnp.sum(m * m, axis=1, keepdims=True)              # (S, 1)
    num = xsq * msq - dots * dots
    den = jnp.maximum(xsq, _EPS2) * jnp.maximum(msq, _EPS2)
    cor = num / den
    o_ref[...] = (x + m * cor).astype(o_ref.dtype)


# ----------------------------------------------------------------------------
# Path 2: tiled two-phase kernel for large flattened feature widths
# ----------------------------------------------------------------------------
def _make_tiled_kernel(*, S, half, tile_w, n_chunks, nacc, use_x_cache, use_mean_cache):
    def kernel(x_ref, o_ref, dots_acc, xsq_acc, msq_acc, cor_ref, *caches):
        ci = 0
        mean_ref = None
        xcache_ref = None
        if use_mean_cache:
            mean_ref = caches[ci]
            ci += 1
        if use_x_cache:
            xcache_ref = caches[ci]
            ci += 1

        phase = pl.program_id(0)
        t = pl.program_id(1)
        row = lax.broadcasted_iota(jnp.int32, (S, 1), 0)
        in_g1 = row < half                                    # (S, 1) bool

        @pl.when(jnp.logical_and(phase == 0, t == 0))
        def _init():
            dots_acc[...] = jnp.zeros_like(dots_acc)
            xsq_acc[...] = jnp.zeros_like(xsq_acc)
            msq_acc[...] = jnp.zeros_like(msq_acc)

        # ---- phase 0: stream the tile in 128-lane chunks, accumulate partials ----
        @pl.when(phase == 0)
        def _accumulate():
            dp = [jnp.zeros((S, _LANES), jnp.float32) for _ in range(nacc)]
            xp = [jnp.zeros((S, _LANES), jnp.float32) for _ in range(nacc)]
            mp = [jnp.zeros((S, _LANES), jnp.float32) for _ in range(nacc)]
            for j in range(n_chunks):
                lo = j * _LANES
                xc = x_ref[:, lo:lo + _LANES].astype(jnp.float32)       # (S, 128)
                m1c = jnp.mean(xc[:half], axis=0, keepdims=True)        # (1, 128)
                m2c = jnp.mean(xc[half:], axis=0, keepdims=True)        # (1, 128)
                mc = jnp.where(in_g1, m1c, m2c)                         # (S, 128)
                k = j % nacc
                dp[k] = dp[k] + xc * mc          # per-row x . mean(group)
                xp[k] = xp[k] + xc * xc          # per-row |x|^2
                mp[k] = mp[k] + mc * mc          # per-row |mean(group)|^2 (replicated)
                if use_mean_cache or use_x_cache:
                    abs_lo = pl.multiple_of(t * tile_w + lo, _LANES)
                    if use_mean_cache:
                        mean_ref[:, pl.ds(abs_lo, _LANES)] = jnp.concatenate(
                            [m1c, m2c], axis=0)
                    if use_x_cache:
                        xcache_ref[:, pl.ds(abs_lo, _LANES)] = x_ref[:, lo:lo + _LANES]
            dots_acc[...] += functools.reduce(lambda a, b: a + b, dp)
            xsq_acc[...] += functools.reduce(lambda a, b: a + b, xp)
            msq_acc[...] += functools.reduce(lambda a, b: a + b, mp)

        # ---- phase transition: one cross-lane reduce + the cor formula ----
        @pl.when(jnp.logical_and(phase == 1, t == 0))
        def _finalize():
            dots = jnp.sum(dots_acc[...], axis=1, keepdims=True)        # (S, 1)
            xsq = jnp.sum(xsq_acc[...], axis=1, keepdims=True)          # (S, 1)
            msq = jnp.sum(msq_acc[...], axis=1, keepdims=True)          # (S, 1)
            num = xsq * msq - dots * dots
            den = jnp.maximum(xsq, _EPS2) * jnp.maximum(msq, _EPS2)
            cor_ref[...] = num / den

        # ---- phase 1: out = x + group_mean * cor, full-row lane-dense stores ----
        @pl.when(phase == 1)
        def _write():
            cor = cor_ref[...]                                          # (S, 1) f32
            for j in range(n_chunks):
                lo = j * _LANES
                abs_lo = pl.multiple_of(t * tile_w + lo, _LANES)
                if use_x_cache:
                    xc = xcache_ref[:, pl.ds(abs_lo, _LANES)].astype(jnp.float32)
                else:
                    xc = x_ref[:, lo:lo + _LANES].astype(jnp.float32)
                if use_mean_cache:
                    pair = mean_ref[:, pl.ds(abs_lo, _LANES)]           # (2, 128)
                    mc = jnp.where(in_g1, pair[0:1, :], pair[1:2, :])
                else:
                    m1c = jnp.mean(xc[:half], axis=0, keepdims=True)
                    m2c = jnp.mean(xc[half:], axis=0, keepdims=True)
                    mc = jnp.where(in_g1, m1c, m2c)
                o_ref[:, lo:lo + _LANES] = (xc + mc * cor).astype(o_ref.dtype)

    return kernel


# ----------------------------------------------------------------------------
# Wrapper
# ----------------------------------------------------------------------------
def group_comp_pallas(x, *, max_tile_lanes=8192, force_tiled=False,
                      allow_x_cache=True, allow_mean_cache=True):
    """x: [S, C, H, W] (any float dtype). Returns same shape/dtype."""
    S, C, H, W = x.shape
    assert S >= 2, "group_comp needs at least 2 samples (two groups)"
    D = C * H * W
    dtype = x.dtype
    itemsize = jnp.dtype(dtype).itemsize
    half = S // 2

    xf = x.reshape(S, D)
    d128 = _round_up(D, _LANES)

    # Sublane packing of the input dtype (f32 -> 8 rows/vreg, bf16 -> 16, int8 -> 32).
    sub_pack = 8 * max(1, 4 // itemsize)
    s_pad = _round_up(S, sub_pack)

    # Per-generation VMEM budget; set the scoped limit explicitly.
    try:
        vmem_cap = int(pltpu.get_tpu_info().vmem_capacity_bytes)
    except Exception:
        vmem_cap = 64 << 20
    vmem_limit = max(24 << 20, min(48 << 20, vmem_cap // 2))   # v7x -> 32 MiB, v5e/v6e -> 48 MiB
    plan_budget = vmem_limit - (6 << 20)                       # headroom for compiler scratch

    single_shot = (not force_tiled) and (S * d128 <= (256 << 10)) and \
        (s_pad * d128 * (2 * itemsize + 48) <= plan_budget)

    if single_shot:
        d_pad = d128
        if d_pad != D:
            xf = jnp.pad(xf, ((0, 0), (0, d_pad - D)))
        out = pl.pallas_call(
            functools.partial(_group_comp_small_kernel, half=half),
            out_shape=jax.ShapeDtypeStruct((S, d_pad), dtype),
            grid=(1,),
            in_specs=[pl.BlockSpec((S, d_pad), lambda i: (0, 0))],
            out_specs=pl.BlockSpec((S, d_pad), lambda i: (0, 0)),
            compiler_params=pltpu.CompilerParams(
                dimension_semantics=("arbitrary",),
                vmem_limit_bytes=vmem_limit),
            cost_estimate=pl.CostEstimate(
                flops=10 * S * d_pad, transcendentals=0,
                bytes_accessed=2 * S * d_pad * itemsize),
        )(xf)
    else:
        # Tile the lane-dense flattened-feature axis; count the sublane-padded
        # in/out double buffers against the block budget.
        block_budget = min(8 << 20, plan_budget // 2)
        per_lane = 4 * s_pad * itemsize                         # (in + out) x double buffer
        cap = max(_LANES, (block_budget // per_lane) // _LANES * _LANES)
        tile = int(min(d128, cap, max_tile_lanes))
        n_t = _cdiv(d128, tile)
        d_pad = n_t * tile
        if d_pad != D:
            # zero padding is reduction-safe (contributes 0 to dots/|x|^2/|mean|^2)
            xf = jnp.pad(xf, ((0, 0), (0, d_pad - D)))

        block_bytes = 4 * s_pad * tile * itemsize
        xcache_bytes = s_pad * d_pad * itemsize                 # full-x on-chip cache
        mean_bytes = 8 * d_pad * 4                              # (2, d_pad) f32, sublane-padded
        slack = 2 << 20
        use_x_cache = allow_x_cache and \
            (block_bytes + xcache_bytes + slack <= plan_budget)
        use_mean_cache = allow_mean_cache and \
            (block_bytes + (xcache_bytes if use_x_cache else 0) + mean_bytes + slack
             <= plan_budget)

        n_chunks = tile // _LANES
        rows_vregs = _cdiv(S, 8)
        nacc = max(1, min(4, 8 // rows_vregs))                  # independent partial accumulators
        nacc = min(nacc, n_chunks)

        scratch = [
            pltpu.VMEM((S, _LANES), jnp.float32),               # per-row partial dots
            pltpu.VMEM((S, _LANES), jnp.float32),               # per-row partial |x|^2
            pltpu.VMEM((S, _LANES), jnp.float32),               # per-row partial |mean|^2
            pltpu.VMEM((S, 1), jnp.float32),                    # final cor per row
        ]
        if use_mean_cache:
            scratch.append(pltpu.VMEM((2, d_pad), jnp.float32))  # cached per-tile group means
        if use_x_cache:
            scratch.append(pltpu.VMEM((S, d_pad), dtype))        # cached input (no 2nd HBM read)

        if use_x_cache:
            # Phase 1 pins the input block index: the pipeline issues no new input
            # DMAs and the kernel reads from the on-chip cache instead.
            in_idx = lambda p, t: (0, t * (1 - p))
        else:
            in_idx = lambda p, t: (0, t)

        kernel = _make_tiled_kernel(
            S=S, half=half, tile_w=tile, n_chunks=n_chunks, nacc=nacc,
            use_x_cache=use_x_cache, use_mean_cache=use_mean_cache)

        reads = 1 if use_x_cache else 2
        out = pl.pallas_call(
            kernel,
            out_shape=jax.ShapeDtypeStruct((S, d_pad), dtype),
            grid=(2, n_t),
            in_specs=[pl.BlockSpec((S, tile), in_idx)],
            # Phase 0 pins the output block index to (0, 0): the never-written buffer
            # is not flushed; phase 1 walks the tiles and fully writes each one.
            out_specs=pl.BlockSpec((S, tile), lambda p, t: (0, p * t)),
            scratch_shapes=scratch,
            compiler_params=pltpu.CompilerParams(
                # Both axes carry the reduction scratch (phase 0 accumulates across
                # tiles, phase 1 consumes it), so neither can be marked "parallel".
                dimension_semantics=("arbitrary", "arbitrary"),
                vmem_limit_bytes=vmem_limit),
            cost_estimate=pl.CostEstimate(
                flops=10 * S * d_pad, transcendentals=0,
                bytes_accessed=(reads + 1) * S * d_pad * itemsize),
        )(xf)

    if d_pad != D:
        out = out[:, :D]
    return out.reshape(S, C, H, W)


# ----------------------------------------------------------------------------
# Plain-JAX reference mirroring the PyTorch module
# ----------------------------------------------------------------------------
def _group_comp_ref(x):
    S, C, H, W = x.shape
    half = S // 2
    xf = x.reshape(S, -1).astype(jnp.float32)
    m1 = jnp.mean(xf[:half], axis=0)
    m2 = jnp.mean(xf[half:], axis=0)

    def enhance(xi, m):
        a = xi / jnp.maximum(jnp.linalg.norm(xi), _EPS)
        b = m / jnp.maximum(jnp.linalg.norm(m), _EPS)
        aa = jnp.dot(a, a)
        bb = jnp.dot(b, b)
        ab = jnp.dot(a, b)
        det = aa * bb - ab * ab
        return xi + m * det

    rows = [enhance(xf[i], m1 if i < half else m2) for i in range(S)]
    return jnp.stack(rows, 0).reshape(S, C, H, W).astype(x.dtype)


if __name__ == "__main__":
    key = jax.random.PRNGKey(0)
    k0, k1 = jax.random.split(key)

    # Primary small case (single-shot path): S=4, C=4, H=W=16 -> D=1024.
    S, C, H, W = 4, 4, 16, 16
    x = jax.random.normal(k0, (S, C, H, W), dtype=jnp.float32)
    ref = _group_comp_ref(x)

    out = jax.block_until_ready(group_comp_pallas(x))
    assert out.shape == (S, C, H, W)
    assert out.dtype == x.dtype
    assert jnp.allclose(out, ref, atol=2e-4, rtol=2e-4), "single-shot mismatch"

    # Tiled two-phase path with on-chip x/mean caches (forced small tiles).
    out_t = jax.block_until_ready(
        group_comp_pallas(x, force_tiled=True, max_tile_lanes=256))
    assert jnp.allclose(out_t, ref, atol=2e-4, rtol=2e-4), "tiled(cached) mismatch"

    # Tiled path without caches (second-HBM-read fallback variant).
    out_n = jax.block_until_ready(
        group_comp_pallas(x, force_tiled=True, max_tile_lanes=256,
                          allow_x_cache=False, allow_mean_cache=False))
    assert jnp.allclose(out_n, ref, atol=2e-4, rtol=2e-4), "tiled(no-cache) mismatch"

    # Odd batch + non-multiple-of-128 feature width (padding path), tiled.
    x2 = jax.random.normal(k1, (5, 3, 10, 10), dtype=jnp.float32)   # D = 300
    ref2 = _group_comp_ref(x2)
    out2 = jax.block_until_ready(
        group_comp_pallas(x2, force_tiled=True, max_tile_lanes=128))
    assert jnp.allclose(out2, ref2, atol=2e-4, rtol=2e-4), "odd-S/padded mismatch"

    print("KERNEL_OK")
</pallas_src>

<mosaic_0001>
module attributes {stable_mosaic.version = 11 : i64} {
  func.func @_group_comp_small_kernel(%arg0: i32, %arg1: memref<4x1024xf32, #tpu.memory_space<vmem>>, %arg2: memref<4x1024xf32, #tpu.memory_space<vmem>>) attributes {dimension_semantics = [#tpu.dimension_semantics<arbitrary>], iteration_bounds = array<i64: 1>, scalar_prefetch = 0 : i64, scratch_operands = 0 : i64, tpu.core_type = #tpu.core_type<tc>, window_params = [{pipeline_mode = #tpu.pipeline_mode<synchronous>, transform_indices = @transform_0, window_bounds = array<i64: 4, 1024>}, {pipeline_mode = #tpu.pipeline_mode<synchronous>, transform_indices = @transform_1, window_bounds = array<i64: 4, 1024>}]} {
    %c0 = arith.constant 0 : index
    %c0_0 = arith.constant 0 : index
    %0 = vector.load %arg1[%c0, %c0_0] : memref<4x1024xf32, #tpu.memory_space<vmem>>, vector<4x1024xf32>
    %1 = vector.extract_strided_slice %0 {offsets = [0, 0], sizes = [2, 1024], strides = [1, 1]} : vector<4x1024xf32> to vector<2x1024xf32>
    %cst = arith.constant dense<0.000000e+00> : vector<1024xf32>
    %2 = vector.multi_reduction <add>, %1, %cst [0] : vector<2x1024xf32> to vector<1024xf32>
    %3 = vector.shape_cast %2 : vector<1024xf32> to vector<1x1024xf32>
    %cst_1 = arith.constant 2.000000e+00 : f32
    %4 = vector.broadcast %cst_1 : f32 to vector<1x1024xf32>
    %5 = arith.divf %3, %4 : vector<1x1024xf32>
    %6 = vector.extract_strided_slice %0 {offsets = [2, 0], sizes = [2, 1024], strides = [1, 1]} : vector<4x1024xf32> to vector<2x1024xf32>
    %cst_2 = arith.constant dense<0.000000e+00> : vector<1024xf32>
    %7 = vector.multi_reduction <add>, %6, %cst_2 [0] : vector<2x1024xf32> to vector<1024xf32>
    %8 = vector.shape_cast %7 : vector<1024xf32> to vector<1x1024xf32>
    %cst_3 = arith.constant 2.000000e+00 : f32
    %9 = vector.broadcast %cst_3 : f32 to vector<1x1024xf32>
    %10 = arith.divf %8, %9 : vector<1x1024xf32>
    %11 = tpu.iota {dimensions = array<i32: 0>} : vector<4x1xi32>
    %c2_i32 = arith.constant 2 : i32
    %12 = vector.broadcast %c2_i32 : i32 to vector<4x1xi32>
    %13 = arith.cmpi slt, %11, %12 : vector<4x1xi32>
    %14 = vector.shape_cast %13 : vector<4x1xi1> to vector<4x1xi1>
    %15 = vector.broadcast %14 : vector<4x1xi1> to vector<4x1024xi1>
    %16 = vector.shape_cast %5 : vector<1x1024xf32> to vector<1x1024xf32>
    %17 = vector.broadcast %16 : vector<1x1024xf32> to vector<4x1024xf32>
    %18 = vector.shape_cast %10 : vector<1x1024xf32> to vector<1x1024xf32>
    %19 = vector.broadcast %18 : vector<1x1024xf32> to vector<4x1024xf32>
    %20 = arith.select %15, %17, %19 : vector<4x1024xi1>, vector<4x1024xf32>
    %21 = arith.mulf %0, %20 : vector<4x1024xf32>
    %cst_4 = arith.constant dense<0.000000e+00> : vector<4xf32>
    %22 = vector.multi_reduction <add>, %21, %cst_4 [1] : vector<4x1024xf32> to vector<4xf32>
    %23 = vector.shape_cast %22 : vector<4xf32> to vector<4x1xf32>
    %24 = arith.mulf %0, %0 : vector<4x1024xf32>
    %cst_5 = arith.constant dense<0.000000e+00> : vector<4xf32>
    %25 = vector.multi_reduction <add>, %24, %cst_5 [1] : vector<4x1024xf32> to vector<4xf32>
    %26 = vector.shape_cast %25 : vector<4xf32> to vector<4x1xf32>
    %27 = arith.mulf %20, %20 : vector<4x1024xf32>
    %cst_6 = arith.constant dense<0.000000e+00> : vector<4xf32>
    %28 = vector.multi_reduction <add>, %27, %cst_6 [1] : vector<4x1024xf32> to vector<4xf32>
    %29 = vector.shape_cast %28 : vector<4xf32> to vector<4x1xf32>
    %30 = arith.mulf %26, %29 : vector<4x1xf32>
    %31 = arith.mulf %23, %23 : vector<4x1xf32>
    %32 = arith.subf %30, %31 : vector<4x1xf32>
    %cst_7 = arith.constant 1.000000e-24 : f32
    %33 = vector.broadcast %cst_7 : f32 to vector<4x1xf32>
    %34 = arith.maximumf %26, %33 : vector<4x1xf32>
    %cst_8 = arith.constant 1.000000e-24 : f32
    %35 = vector.broadcast %cst_8 : f32 to vector<4x1xf32>
    %36 = arith.maximumf %29, %35 : vector<4x1xf32>
    %37 = arith.mulf %34, %36 : vector<4x1xf32>
    %38 = arith.divf %32, %37 : vector<4x1xf32>
    %39 = vector.broadcast %38 : vector<4x1xf32> to vector<4x1024xf32>
    %40 = arith.mulf %20, %39 : vector<4x1024xf32>
    %41 = arith.addf %0, %40 : vector<4x1024xf32>
    %c0_9 = arith.constant 0 : index
    %c0_10 = arith.constant 0 : index
    %42 = vector.load %arg2[%c0_9, %c0_10] : memref<4x1024xf32, #tpu.memory_space<vmem>>, vector<4x1024xf32>
    tpu.vector_store %arg2[%c0_9, %c0_10], %41 {strides = array<i32>} : memref<4x1024xf32, #tpu.memory_space<vmem>>, vector<4x1024xf32>,
    return
  }
  func.func @transform_0(%arg0: i32) -> (i32, i32) {
    %c0_i32 = arith.constant 0 : i32
    %c0_i32_0 = arith.constant 0 : i32
    %c0_i32_1 = arith.constant 0 : i32
    return %c0_i32, %c0_i32_0 : i32, i32
  }
  func.func @transform_1(%arg0: i32) -> (i32, i32) {
    %c0_i32 = arith.constant 0 : i32
    %c0_i32_0 = arith.constant 0 : i32
    %c0_i32_1 = arith.constant 0 : i32
    return %c0_i32, %c0_i32_0 : i32, i32
  }
}

</mosaic_0001>

<bundles_post_ra>
// kernel: tpu_custom_call.1
= control target key start
LH: loop header
LB: loop body
LE: loop exit
PB: predicated region body
PF: predicated region fallthrough
CT: control target
= control target key end

     0   :  { %6 = vsyncpa [#allocation3], 0  ;;  %s608_s0 = inlined_call_operand.hbm [shape: f32[4,1024], index: 0, kind: input, shape index: {}]   ;;  %s609_s1 = inlined_call_operand.hbm [shape: f32[4,1024], index: 1, kind: output, shape index: {}]  }
   0x1   :  { %7 = vsyncpa [#allocation4], 0  ;;  %s411_s6 = smov [#allocation2]  }
   0x2   :  { %s14_s7 = sshll.u32 %s411_s6, 4  ;;  %s15_s7 = int_to_ptr.vmem [resolvable:$true] %s14_s7 }
   0x3   :  { %s375_s8 = scalar_lea.vmem %s15_s7, 512  ;;  %p380_p1 = scmp.lt.s32.totalorder %s15_s7, %s15_s7 }
   0x4   :  { %p376_p0 = scmp.ne.s32.totalorder %s15_s7, %s375_s8  ;;  %p381_p2 = scmp.lt.s32.totalorder %s375_s8, %s375_s8 }
   0x6   :  { %p382_p3 = por %p381_p2, %p380_p1 }
   0x8   :  { %p383_p4 = pnand %p382_p3, %p376_p0 }
   0xa   :  { %386 = shalt.err (!%p383_p4)
}
   0xb   :  { %17 = dma.hbm_to_vmem [thread:$0]  %s608_s0, 512, %s15_s7, [#allocation3]  }
   0xc   :  { %407 = dma.done.wait [#allocation3], 512  }
   0xd   :  { %408 = vsyncadd [#allocation3], 4294966784  ;;  %v426_v0 = vld [vmem:[#allocation2] sm:$0xff]  ;;  %v428_v1 = vld [vmem:[#allocation2 + $0x8] sm:$0xff]  ;;  %vm228_vm0 = vcmask 1043456   ;;  %vm37_vm1 = vcmask 1041408   ;;  %v183_v3 = vlaneseq }
   0xe   :  { %v430_v2 = vld [vmem:[#allocation2 + $0x10] sm:$0xff]  ;;  %v432_v4 = vld [vmem:[#allocation2 + $0x18] sm:$0xff]  ;;  %v246_v5 = vmul.f32 %v426_v0, %v426_v0  ;;  %v247_v6 = vmul.f32 %v428_v1, %v428_v1  ;;  %v442_v8 = vcombine.high %v426_v0, %v426_v0  ;;  %v448_v10 = vcombine.high %v428_v1, %v428_v1  ;;  %s412_s0 = smov [#allocation5]  }
   0xf   :  { %v248_v7 = vmul.f32 %v430_v2, %v430_v2  ;;  %v249_v9 = vmul.f32 %v432_v4, %v432_v4  ;;  %v452_v11 = vcombine.high %v430_v2, %v430_v2  ;;  %v456_v12 = vcombine.high %v432_v4, %v432_v4  ;;  %s350_s11 = sshll.u32 %s412_s0, 4  ;;  %s351_s11 = int_to_ptr.vmem [resolvable:$true] %s350_s11 }
  0x10   :  { %v254_v13 = vcombine.high %v246_v5, %v246_v5  ;;  %v255_v14 = vcombine.high %v247_v6, %v247_v6  ;;  %v262_v16 = vsel %vm228_vm0, %v246_v5, 0.0  ;;  %v265_v18 = vsel %vm228_vm0, %v247_v6, 0.0  ;;  %s387_s12 = scalar_lea.vmem %s351_s11, 512  ;;  %p392_p6 = scmp.lt.s32.totalorder %s351_s11, %s351_s11 }
  0x11   :  { %v256_v15 = vcombine.high %v248_v7, %v248_v7  ;;  %v257_v17 = vcombine.high %v249_v9, %v249_v9  ;;  %v269_v19 = vsel %vm228_vm0, %v248_v7, 0.0  ;;  %v273_v20 = vsel %vm228_vm0, %v249_v9, 0.0  ;;  %p388_p5 = scmp.ne.s32.totalorder %s351_s11, %s387_s12  ;;  %p393_p7 = scmp.lt.s32.totalorder %s387_s12, %s387_s12 }
  0x12   :  { %v263_v21 = vsel %vm228_vm0, %v254_v13, 0.0  ;;  %v267_v22 = vsel %vm228_vm0, %v255_v14, 0.0  ;;  %v38_v24 = vsel %vm37_vm1, %v426_v0, 0.0  ;;  %v45_v28 = vsel %vm37_vm1, %v442_v8, 0.0 }
  0x13   :  { %v271_v23 = vsel %vm228_vm0, %v256_v15, 0.0  ;;  %v264_v25 = vadd.f32 %v263_v21, %v262_v16  ;;  %v275_v26 = vsel %vm228_vm0, %v257_v17, 0.0  ;;  %v39_v27 = vrot.slane %v38_v24, 4  ;;  %p394_p8 = por %p393_p7, %p392_p6 }
  0x14   :  { %v46_v29 = vrot.slane %v45_v28, 4  ;;  %v52_v30 = vsel %vm37_vm1, %v428_v1, 0.0  ;;  %v59_v31 = vsel %vm37_vm1, %v448_v10, 0.0  ;;  %v66_v32 = vsel %vm37_vm1, %v430_v2, 0.0 }
  0x15   :  { %v266_v33 = vadd.f32 %v265_v18, %v264_v25  ;;  %v40_v34 = vadd.f32 %v39_v27, %v38_v24  ;;  %v53_v35 = vrot.slane %v52_v30, 4  ;;  %v60_v36 = vrot.slane %v59_v31, 4  ;;  %p395_p9 = pnand %p394_p8, %p388_p5 }
  0x16   :  { %v47_v37 = vadd.f32 %v46_v29, %v45_v28  ;;  %v67_v38 = vrot.slane %v66_v32, 4  ;;  %v73_v39 = vsel %vm37_vm1, %v452_v11, 0.0  ;;  %v80_v40 = vsel %vm37_vm1, %v432_v4, 0.0 }
  0x17   :  { %v268_v41 = vadd.f32 %v267_v22, %v266_v33  ;;  %v41_v42 = vrot.slane %v40_v34, 2  ;;  %v54_v43 = vadd.f32 %v53_v35, %v52_v30  ;;  %v61_v44 = vadd.f32 %v60_v36, %v59_v31 }
  0x18   :  { %v48_v45 = vrot.slane %v47_v37, 2  ;;  %v68_v46 = vadd.f32 %v67_v38, %v66_v32  ;;  %v74_v47 = vrot.slane %v73_v39, 4  ;;  %v81_v48 = vrot.slane %v80_v40, 4 }
  0x19   :  { %v270_v49 = vadd.f32 %v269_v19, %v268_v41  ;;  %v42_v50 = vadd.f32 %v41_v42, %v40_v34  ;;  %v55_v51 = vrot.slane %v54_v43, 2  ;;  %v62_v52 = vrot.slane %v61_v44, 2 }
  0x1a   :  { %v49_v53 = vadd.f32 %v48_v45, %v47_v37  ;;  %v69_v54 = vrot.slane %v68_v46, 2  ;;  %v75_v55 = vadd.f32 %v74_v47, %v73_v39  ;;  %v82_v56 = vadd.f32 %v81_v48, %v80_v40 }
  0x1b   :  { %v272_v57 = vadd.f32 %v271_v23, %v270_v49  ;;  %v43_v58 = vrot.slane %v42_v50, 1  ;;  %v56_v59 = vadd.f32 %v55_v51, %v54_v43  ;;  %v63_v60 = vadd.f32 %v62_v52, %v61_v44 }
  0x1c   :  { %v50_v61 = vrot.slane %v49_v53, 1  ;;  %v70_v62 = vadd.f32 %v69_v54, %v68_v46  ;;  %v76_v63 = vrot.slane %v75_v55, 2  ;;  %v83_v5 = vrot.slane %v82_v56, 2 }
  0x1d   :  { %v274_v6 = vadd.f32 %v273_v20, %v272_v57  ;;  %v44_v7 = vadd.f32 %v43_v58, %v42_v50  ;;  %v57_v9 = vrot.slane %v56_v59, 1  ;;  %v64_v13 = vrot.slane %v63_v60, 1 }
  0x1e   :  { %v51_v14 = vadd.f32 %v50_v61, %v49_v53  ;;  %v71_v15 = vrot.slane %v70_v62, 1  ;;  %v77_v16 = vadd.f32 %v76_v63, %v75_v55  ;;  %v84_v17 = vadd.f32 %v83_v5, %v82_v56 }
  0x1f   :  { %v276_v18 = vadd.f32 %v275_v26, %v274_v6  ;;  %v58_v19 = vadd.f32 %v57_v9, %v56_v59  ;;  %v65_v21 = vadd.f32 %v64_v13, %v63_v60  ;;  %v87_v22 = vsel %vm37_vm1, %v456_v12, 0.0 }
  0x20   :  { %v72_v23 = vadd.f32 %v71_v15, %v70_v62  ;;  %v78_v24 = vrot.slane %v77_v16, 1  ;;  %v85_v25 = vrot.slane %v84_v17, 1  ;;  %v88_v27 = vrot.slane %v87_v22, 4 }
  0x21   :  { %277 = vadd.xlane.f32.xlu0 %v276_v18  ;;  %v482_v28 = vmul.f32 0.5, %v44_v7  ;;  %v484_v20 = vmul.f32 0.5, %v51_v14  ;;  %v486_v29 = vmul.f32 0.5, %v58_v19  ;;  %v489_v30 = vshrl.u32 %v183_v3, 7 }
  0x22   :  { %v79_v26 = vadd.f32 %v78_v24, %v77_v16  ;;  %v86_v31 = vadd.f32 %v85_v25, %v84_v17  ;;  %v89_v32 = vadd.f32 %v88_v27, %v87_v22  ;;  %v491_v33 = vmul.f32 0.5, %v65_v21 }
  0x23   :  { %v103_v34 = vrot.slane %v426_v0, 2  ;;  %v104_v35 = vrot.slane %v442_v8, 2  ;;  %v105_v36 = vrot.slane %v428_v1, 2  ;;  %v106_v37 = vrot.slane %v448_v10, 2 }
  0x24   :  { %v90_v38 = vrot.slane %v89_v32, 2  ;;  %v497_v39 = vmul.f32 0.5, %v72_v23  ;;  %v499_v40 = vmul.f32 0.5, %v79_v26  ;;  %v107_v3 = vrot.slane %v430_v2, 2 }
  0x25   :  { %v502_v41 = vmul.f32 0.5, %v86_v31  ;;  %v108_v42 = vrot.slane %v452_v11, 2  ;;  %v109_v43 = vrot.slane %v432_v4, 2  ;;  %v119_v44 = vsel %vm37_vm1, %v103_v34, 0.0 }
  0x26   :  { %v91_v8 = vadd.f32 %v90_v38, %v89_v32  ;;  %v120_v45 = vrot.slane %v119_v44, 4  ;;  %v126_v46 = vsel %vm37_vm1, %v104_v35, 0.0  ;;  %v133_v10 = vsel %vm37_vm1, %v105_v36, 0.0 }
  0x27   :  { %v127_v47 = vrot.slane %v126_v46, 4  ;;  %v134_v48 = vrot.slane %v133_v10, 4  ;;  %v140_v49 = vsel %vm37_vm1, %v106_v37, 0.0  ;;  %v147_v50 = vsel %vm37_vm1, %v107_v3, 0.0 }
  0x28   :  { %v92_v51 = vrot.slane %v91_v8, 1  ;;  %v121_v52 = vadd.f32 %v120_v45, %v119_v44  ;;  %v141_v53 = vrot.slane %v140_v49, 4  ;;  %v148_v11 = vrot.slane %v147_v50, 4 }
  0x29   :  { %v128_v54 = vadd.f32 %v127_v47, %v126_v46  ;;  %v135_v55 = vadd.f32 %v134_v48, %v133_v10  ;;  %v154_v56 = vsel %vm37_vm1, %v108_v42, 0.0  ;;  %v161_v57 = vsel %vm37_vm1, %v109_v43, 0.0 }
  0x2a   :  { %vm185_vm2 = vcmp.lt.s32.totalorder %v489_v30, 2  ;;  %v110_v58 = vrot.slane %v456_v12, 2  ;;  %v122_v59 = vrot.slane %v121_v52, 2  ;;  %v142_v60 = vadd.f32 %v141_v53, %v140_v49 }
  0x2b   :  { %v149_v61 = vadd.f32 %v148_v11, %v147_v50  ;;  %v129_v62 = vrot.slane %v128_v54, 2  ;;  %v136_v63 = vrot.slane %v135_v55, 2  ;;  %v155_v5 = vrot.slane %v154_v56, 4 }
  0x2c   :  { %v162_v6 = vrot.slane %v161_v57, 4  ;;  %v93_v7 = vadd.f32 %v92_v51, %v91_v8  ;;  %v123_v9 = vadd.f32 %v122_v59, %v121_v52  ;;  %v143_v13 = vrot.slane %v142_v60, 2 }
  0x2d   :  { %v150_v14 = vrot.slane %v149_v61, 2  ;;  %v130_v15 = vadd.f32 %v129_v62, %v128_v54  ;;  %v137_v16 = vadd.f32 %v136_v63, %v135_v55  ;;  %v156_v17 = vadd.f32 %v155_v5, %v154_v56 }
  0x2e   :  { %v163_v18 = vadd.f32 %v162_v6, %v161_v57  ;;  %v124_v19 = vrot.slane %v123_v9, 1  ;;  %v144_v21 = vadd.f32 %v143_v13, %v142_v60  ;;  %v168_v12 = vsel %vm37_vm1, %v110_v58, 0.0 }
  0x2f   :  { %v151_v22 = vadd.f32 %v150_v14, %v149_v61  ;;  %v131_v23 = vrot.slane %v130_v15, 1  ;;  %v138_v24 = vrot.slane %v137_v16, 1  ;;  %v157_v25 = vrot.slane %v156_v17, 2 }
  0x30   :  { %v164_v27 = vrot.slane %v163_v18, 2  ;;  %v125_v26 = vadd.f32 %v124_v19, %v123_v9  ;;  %v145_v31 = vrot.slane %v144_v21, 1  ;;  %v169_v34 = vrot.slane %v168_v12, 4 }
  0x31   :  { %v152_v32 = vrot.slane %v151_v22, 1  ;;  %v132_v35 = vadd.f32 %v131_v23, %v130_v15  ;;  %v139_v36 = vadd.f32 %v138_v24, %v137_v16  ;;  %v158_v37 = vadd.f32 %v157_v25, %v156_v17 }
  0x32   :  { %v165_v38 = vadd.f32 %v164_v27, %v163_v18  ;;  %v146_v3 = vadd.f32 %v145_v31, %v144_v21  ;;  %v170_v43 = vadd.f32 %v169_v34, %v168_v12  ;;  %v175_v44 = vmul.f32 0.5, %v125_v26 }
  0x33   :  { %v153_v42 = vadd.f32 %v152_v32, %v151_v22  ;;  %v159_v8 = vrot.slane %v158_v37, 1  ;;  %v176_v46 = vmul.f32 0.5, %v132_v35  ;;  %v177_v10 = vmul.f32 0.5, %v139_v36 }
  0x34   :  { %v166_v45 = vrot.slane %v165_v38, 1  ;;  %v171_v47 = vrot.slane %v170_v43, 2  ;;  %v178_v48 = vmul.f32 0.5, %v146_v3  ;;  %v519_v50 = vsel %vm185_vm2, %v482_v28, %v175_v44 }
  0x35   :  { %v179_v49 = vmul.f32 0.5, %v153_v42  ;;  %v160_v51 = vadd.f32 %v159_v8, %v158_v37  ;;  %v524_v53 = vsel %vm185_vm2, %v484_v20, %v176_v46  ;;  %v529_v11 = vsel %vm185_vm2, %v486_v29, %v177_v10 }
  0x36   :  { %v167_v52 = vadd.f32 %v166_v45, %v165_v38  ;;  %v172_v54 = vadd.f32 %v171_v47, %v170_v43  ;;  %v534_v55 = vsel %vm185_vm2, %v491_v33, %v178_v48  ;;  %v279_v20 = vmul.f32 %v519_v50, %v519_v50 }
  0x37   :  { %v539_v28 = vsel %vm185_vm2, %v497_v39, %v179_v49  ;;  %v180_v56 = vmul.f32 0.5, %v160_v51  ;;  %v280_v29 = vmul.f32 %v524_v53, %v524_v53  ;;  %v281_v58 = vmul.f32 %v529_v11, %v529_v11 }
  0x38   :  { %v181_v57 = vmul.f32 0.5, %v167_v52  ;;  %v173_v59 = vrot.slane %v172_v54, 1  ;;  %v282_v33 = vmul.f32 %v534_v55, %v534_v55  ;;  %v283_v60 = vmul.f32 %v539_v28, %v539_v28 }
  0x39   :  { %v287_v39 = vsel %vm228_vm0, %v279_v20, 0.0  ;;  %v555_v61 = vsel %vm185_vm2, %v499_v40, %v180_v56  ;;  %v288_v63 = vsel %vm228_vm0, %v280_v29, 0.0  ;;  %v290_v5 = vsel %vm228_vm0, %v281_v58, 0.0 }
  0x3a   :  { %v560_v62 = vsel %vm185_vm2, %v502_v41, %v181_v57  ;;  %v102_v6 = vmul.f32 0.5, %v93_v7  ;;  %v174_v9 = vadd.f32 %v173_v59, %v172_v54  ;;  %v284_v13 = vmul.f32 %v555_v61, %v555_v61 }
  0x3b   :  { %v289_v14 = vadd.f32 %v288_v63, %v287_v39  ;;  %v292_v15 = vsel %vm228_vm0, %v282_v33, 0.0  ;;  %v204_v40 = vcombine.low %v519_v50, %v524_v53  ;;  %v205_v16 = vcombine.low %v529_v11, %v534_v55 }
  0x3c   :  { %v182_v41 = vmul.f32 0.5, %v174_v9  ;;  %v285_v17 = vmul.f32 %v560_v62, %v560_v62  ;;  %v294_v7 = vsel %vm228_vm0, %v283_v60, 0.0  ;;  %v206_v19 = vcombine.low %v539_v28, %v555_v61 }
  0x3d   :  { %v291_v18 = vadd.f32 %v290_v5, %v289_v14  ;;  %v212_v21 = vmul.f32 %v204_v40, %v426_v0  ;;  %v213_v22 = vmul.f32 %v205_v16, %v428_v1  ;;  %v296_v24 = vsel %vm228_vm0, %v284_v13, 0.0 }
  0x3e   :  { %v195_v12 = vsel %vm185_vm2, %v102_v6, %v182_v41  ;;  %v214_v26 = vmul.f32 %v206_v19, %v430_v2  ;;  %v298_v36 = vsel %vm228_vm0, %v285_v17, 0.0 }
  0x3f   :  { %v293_v23 = vadd.f32 %v292_v15, %v291_v18  ;;  %v286_v25 = vmul.f32 %v195_v12, %v195_v12  ;;  %v207_v27 = vcombine.low %v560_v62, %v195_v12  ;;  %v220_v31 = vcombine.high %v212_v21, %v212_v21 }
  0x40   :  { %v221_v34 = vcombine.high %v213_v22, %v213_v22  ;;  %v229_v35 = vsel %vm228_vm0, %v212_v21, 0.0  ;;  %v232_v30 = vsel %vm228_vm0, %v213_v22, 0.0  ;;  %v222_v44 = vcombine.high %v214_v26, %v214_v26 }
  0x41   :  { %v295_v32 = vadd.f32 %v294_v7, %v293_v23  ;;  %v230_v37 = vsel %vm228_vm0, %v220_v31, 0.0  ;;  %v300_v42 = vsel %vm228_vm0, %v286_v25, 0.0  ;;  %v215_v43 = vmul.f32 %v207_v27, %v432_v4 }
  0x42   :  { %v231_v3 = vadd.f32 %v230_v37, %v229_v35  ;;  %v234_v8 = vsel %vm228_vm0, %v221_v34, 0.0  ;;  %v236_v10 = vsel %vm228_vm0, %v214_v26, 0.0  ;;  %v238_v51 = vsel %vm228_vm0, %v222_v44, 0.0 }
  0x43   :  { %v297_v38 = vadd.f32 %v296_v24, %v295_v32  ;;  %v223_v49 = vcombine.high %v215_v43, %v215_v43  ;;  %v240_v54 = vsel %vm228_vm0, %v215_v43, 0.0 }
  0x44   :  { %v233_v46 = vadd.f32 %v232_v30, %v231_v3 }
  0x45   :  { %v299_v45 = vadd.f32 %v298_v36, %v297_v38  ;;  %v242_v56 = vsel %vm228_vm0, %v223_v49, 0.0 }
  0x46   :  { %v235_v48 = vadd.f32 %v234_v8, %v233_v46 }
  0x47   :  { %v301_v47 = vadd.f32 %v300_v42, %v299_v45 }
  0x48   :  { %v237_v52 = vadd.f32 %v236_v10, %v235_v48 }
  0x49   :  { %302 = vadd.xlane.f32.xlu0 %v301_v47 }
  0x4a   :  { %v239_v20 = vadd.f32 %v238_v51, %v237_v52 }
  0x4c   :  { %v241_v57 = vadd.f32 %v240_v54, %v239_v20 }
  0x4e   :  { %v243_v29 = vadd.f32 %v242_v56, %v241_v57 }
  0x50   :  { %244 = vadd.xlane.f32.xlu1 %v243_v29 }
  0xaa   :  { %v278_v58 = vpop.xlane.xlu0 %277 }
  0xab   :  { %v307_v33 = vmax.f32 %v278_v58, 1e-24 }
  0xd2   :  { %v303_v59 = vpop.xlane.xlu0 %302 }
  0xd3   :  { %v308_v60 = vmax.f32 %v303_v59, 1e-24  ;;  %v304_v6 = vmul.f32 %v303_v59, %v278_v58 }
  0xd5   :  { %v309_v39 = vmul.f32 %v308_v60, %v307_v33 }
  0xd7   :  { %365 = vrcp.f32 %v309_v39 }
  0xd9   :  { %v245_v63 = vpop.xlane.xlu1 %244 }
  0xda   :  { %v305_v5 = vmul.f32 %v245_v63, %v245_v63 }
  0xdc   :  { %v306_v9 = vsub.f32 %v304_v6, %v305_v5 }
  0xe4   :  { %v366_v13 = vpop.eup %365 }
  0xe5   :  { %v311_v14 = vmul.f32 %v366_v13, %v306_v9 }
  0xe7   :  { %v312_v15 = vmul.f32 %v311_v14, %v519_v50  ;;  %v313_v40 = vmul.f32 %v311_v14, %v524_v53  ;;  %v314_v16 = vmul.f32 %v311_v14, %v529_v11  ;;  %v315_v41 = vmul.f32 %v311_v14, %v534_v55 }
  0xe8   :  { %v316_v17 = vmul.f32 %v311_v14, %v539_v28  ;;  %v317_v18 = vmul.f32 %v311_v14, %v555_v61  ;;  %v318_v7 = vmul.f32 %v311_v14, %v560_v62  ;;  %v319_v19 = vmul.f32 %v311_v14, %v195_v12 }
  0xe9   :  { %v328_v21 = vcombine.low %v312_v15, %v313_v40  ;;  %v329_v22 = vcombine.low %v314_v16, %v315_v41 }
  0xea   :  { %v330_v23 = vcombine.low %v316_v17, %v317_v18  ;;  %v331_v24 = vcombine.low %v318_v7, %v319_v19 }
  0xeb   :  { %v336_v50 = vadd.f32 %v328_v21, %v426_v0  ;;  %v337_v53 = vadd.f32 %v329_v22, %v428_v1 }
  0xec   :  { %v338_v11 = vadd.f32 %v330_v23, %v430_v2  ;;  %v339_v55 = vadd.f32 %v331_v24, %v432_v4 }
  0xed   :  { %340 = vst [vmem:[#allocation5] sm:$0xff] %v336_v50  ;;  %341 = vst [vmem:[#allocation5 + $0x8] sm:$0xff] %v337_v53 }
  0xee   :  { %342 = vst [vmem:[#allocation5 + $0x10] sm:$0xff] %v338_v11  ;;  %343 = vst [vmem:[#allocation5 + $0x18] sm:$0xff] %v339_v55 }
  0xef   :  { %398 = shalt.err (!%p395_p9)
}
  0xf0   :  { %353 = dma.vmem_to_hbm [thread:$0]  %s351_s11, 512, %s609_s1, [#allocation4]  }
  0xf1   :  { %409 = dma.done.wait [#allocation4], 512  }
  0xf2   :  { %410 = vsyncadd [#allocation4], 4294966784 }
  0xf3   :  { %357 = vsyncpa [#allocation3], 1 }
  0xf4   :  { %358 = vsyncpa [#allocation4], 1 }

</bundles_post_ra>
